<compile_context>
chip_gen: v6e
topology: v6e:2x2x1
jax: 0.10.0
libtpu: 0.0.40
codegen_flags: <defaults>
</compile_context>

<pallas_src>
import jax
import jax.numpy as jnp
from jax.experimental import pallas as pl
from jax.experimental.pallas import tpu as pltpu


def _pick_batch_tile(B, T, *, target_rows=512, score_budget_bytes=4 * 1024 * 1024):
    """Batch-tile size: ~target_rows MXU rows, capped by the per-head f32 score
    footprint (bt*T*T*4) and by the need for >= 2 parallel grid steps (v7x)."""
    bt = max(1, min(B, max(1, target_rows // max(T, 1))))
    max_by_scores = max(1, score_budget_bytes // max(1, T * T * 4))
    bt = min(bt, max_by_scores)
    if B >= 2:
        bt = min(bt, B // 2)          # keep both v7x TensorCores fed
    bt = max(bt, 1)
    while B % bt:                     # must divide B
        bt -= 1
    return bt


def _vmem_limit_bytes():
    """Generation-aware scoped-VMEM limit (~3/4 of physical, capped)."""
    try:
        cap = pltpu.get_tpu_info().vmem_capacity_bytes
    except Exception:
        cap = 64 * 1024 * 1024
    return max(32 * 1024 * 1024, min(int(cap) * 3 // 4, 100 * 1024 * 1024))


def _mha_kernel(x_ref, wqkv_ref, wp_ref, bp_ref, o_ref, acc_ref):
    """One grid step == (one batch tile, one head).

    x_ref    : (Bt, T, E)    input block (constant across the head axis)
    wqkv_ref : (E, 3*Dh)     this head's fused [q | k | v] weights (q pre-scaled)
    wp_ref   : (Dh, E)       this head's rows of the output projection
    bp_ref   : (1, E)        output projection bias (f32)
    o_ref    : (Bt, T, E)    output block (written on the last head step)
    acc_ref  : (Bt*T, E) f32 VMEM accumulator for the head-decomposed projection
    """
    h = pl.program_id(1)
    n_heads = pl.num_programs(1)
    Bt, T, E = x_ref.shape
    Dh = wp_ref.shape[0]
    cdt = x_ref.dtype                          # MXU operand dtype (bf16 fast path)

    @pl.when(h == 0)
    def _():
        acc_ref[...] = jnp.zeros_like(acc_ref)

    # Fused per-head QKV projection, batch folded into M: (Bt*T, E) @ (E, 3Dh).
    # f32 MXU accumulation, then a single cast back to the operand dtype.
    x2 = x_ref[...].reshape(Bt * T, E)
    qkv = jnp.dot(x2, wqkv_ref[...], preferred_element_type=jnp.float32).astype(cdt)

    q = qkv[:, 0:Dh].reshape(Bt, T, Dh)        # 1/sqrt(Dh) already folded into weights
    k = qkv[:, Dh:2 * Dh].reshape(Bt, T, Dh)
    v = qkv[:, 2 * Dh:3 * Dh].reshape(Bt, T, Dh)

    # Scores (single-batch-dim einsum), causal mask fused on the f32 score tile.
    s = jnp.einsum('btd,bsd->bts', q, k, preferred_element_type=jnp.float32)
    row = jax.lax.broadcasted_iota(jnp.int32, (T, T), 0)
    col = jax.lax.broadcasted_iota(jnp.int32, (T, T), 1)
    s = jnp.where(col <= row, s, jnp.float32(-1e30))

    # Numerically-stable softmax; EUP reciprocal (approx) for the denominator.
    s = s - jnp.max(s, axis=-1, keepdims=True)
    p = jnp.exp(s)
    p = p * pl.reciprocal(jnp.sum(p, axis=-1, keepdims=True), approx=True)
    # attention dropout -> identity in eval mode

    o = jnp.einsum('bts,bsd->btd', p.astype(cdt), v,
                   preferred_element_type=jnp.float32)          # (Bt, T, Dh)

    # Head-decomposed output projection: acc += o_h @ Wp_h  (no lane concat).
    acc_ref[...] += jnp.dot(o.reshape(Bt * T, Dh).astype(cdt), wp_ref[...],
                            preferred_element_type=jnp.float32)

    @pl.when(h == n_heads - 1)
    def _():
        out = acc_ref[...] + bp_ref[...]
        # output dropout -> identity in eval mode
        o_ref[...] = out.reshape(Bt, T, E).astype(o_ref.dtype)


def multi_head_attention(x, wq, wk, wv, wp, bp, *, batch_tile=None):
    """x: (B, T, E); wq/wk/wv: (H, E, Dh); wp: (E, E) (applied as x @ wp); bp: (1, E)."""
    B, T, E = x.shape
    H, E2, Dh = wq.shape
    assert E2 == E and H * Dh == E, "n_heads * head_size must equal em_dims"

    # Per-head fused [q|k|v] weights (H, E, 3*Dh); fold 1/sqrt(Dh) into the query
    # columns in f32 *before* the bf16 cast (one-time, wrapper-side).
    scale = jnp.float32(Dh) ** -0.5
    wqkv = jnp.concatenate([wq.astype(jnp.float32) * scale,
                            wk.astype(jnp.float32),
                            wv.astype(jnp.float32)], axis=-1).astype(x.dtype)
    wp3 = wp.reshape(H, Dh, E).astype(x.dtype)       # head-major rows of Wp
    bp32 = bp.reshape(1, E).astype(jnp.float32)

    bt = batch_tile or _pick_batch_tile(B, T)
    grid = (B // bt, H)

    # Advisory cost estimate for XLA's scheduler.
    flops = (2 * B * T * E * (3 * E)          # QKV projections (summed over heads)
             + 4 * B * H * T * T * Dh         # scores + p @ v
             + 2 * B * T * E * E)             # output projection
    itemsize = jnp.dtype(x.dtype).itemsize
    bytes_accessed = int((x.size + B * T * E) * itemsize
                         + (B // bt) * (wqkv.size + wp3.size) * itemsize
                         + bp32.size * 4)
    cost = pl.CostEstimate(flops=int(flops),
                           transcendentals=int(B * H * T * T),
                           bytes_accessed=bytes_accessed)

    return pl.pallas_call(
        _mha_kernel,
        out_shape=jax.ShapeDtypeStruct((B, T, E), x.dtype),
        grid_spec=pltpu.PrefetchScalarGridSpec(
            num_scalar_prefetch=0,
            grid=grid,
            in_specs=[
                pl.BlockSpec((bt, T, E), lambda b, h: (b, 0, 0)),       # x (const in h)
                pl.BlockSpec((None, E, 3 * Dh), lambda b, h: (h, 0, 0)),  # head QKV weights
                pl.BlockSpec((None, Dh, E), lambda b, h: (h, 0, 0)),      # head proj rows
                pl.BlockSpec((1, E), lambda b, h: (0, 0)),                # proj bias
            ],
            out_specs=pl.BlockSpec((bt, T, E), lambda b, h: (b, 0, 0)),
            scratch_shapes=[pltpu.VMEM((bt * T, E), jnp.float32)],
        ),
        compiler_params=pltpu.CompilerParams(
            dimension_semantics=("parallel", "arbitrary"),
            vmem_limit_bytes=_vmem_limit_bytes(),
        ),
        cost_estimate=cost,
    )(x, wqkv, wp3, bp32)


def reference(x, wq, wk, wv, wp, bp):
    """Pure-JAX f32 reference mirroring the PyTorch forward (eval mode)."""
    B, T, E = x.shape
    H, _, D = wq.shape
    causal = jnp.tril(jnp.ones((T, T), dtype=bool))
    outs = []
    for h in range(H):
        q = x @ wq[h]
        k = x @ wk[h]
        v = x @ wv[h]
        s = (q @ jnp.swapaxes(k, -2, -1)) * (D ** -0.5)
        s = jnp.where(causal, s, -jnp.inf)
        p = jax.nn.softmax(s, axis=-1)
        outs.append(p @ v)
    cat = jnp.concatenate(outs, axis=-1)
    return cat @ wp + bp[0]


if __name__ == "__main__":
    # Small shapes consistent with the module: em_dims = n_heads * head_size.
    B, T = 2, 8            # batch, context_len
    E = 32                 # em_dims
    H, Dh = 4, 8           # n_heads, head_size

    key = jax.random.PRNGKey(0)
    kx, kq, kk, kv, kp, kb = jax.random.split(key, 6)

    x = jax.random.normal(kx, (B, T, E), dtype=jnp.float32)
    wq = jax.random.normal(kq, (H, E, Dh), dtype=jnp.float32) * (E ** -0.5)
    wk = jax.random.normal(kk, (H, E, Dh), dtype=jnp.float32) * (E ** -0.5)
    wv = jax.random.normal(kv, (H, E, Dh), dtype=jnp.float32) * (E ** -0.5)
    wp = jax.random.normal(kp, (E, E), dtype=jnp.float32) * (E ** -0.5)
    bp = jax.random.normal(kb, (1, E), dtype=jnp.float32) * 0.01

    # bf16 operands -> MXU fast path; accumulation stays f32 inside the kernel.
    xb = x.astype(jnp.bfloat16)
    wqb = wq.astype(jnp.bfloat16)
    wkb = wk.astype(jnp.bfloat16)
    wvb = wv.astype(jnp.bfloat16)
    wpb = wp.astype(jnp.bfloat16)

    out = multi_head_attention(xb, wqb, wkb, wvb, wpb, bp)
    out = jax.block_until_ready(out)

    # Reference computed in f32 on the same (bf16-rounded) parameter values.
    ref = reference(xb.astype(jnp.float32),
                    wqb.astype(jnp.float32),
                    wkb.astype(jnp.float32),
                    wvb.astype(jnp.float32),
                    wpb.astype(jnp.float32),
                    bp)
    assert out.shape == (B, T, E)
    assert jnp.allclose(out.astype(jnp.float32), ref, atol=5e-2, rtol=5e-2), \
        "mismatch vs JAX reference"

    print("KERNEL_OK")
</pallas_src>

<mosaic_0001>
module attributes {stable_mosaic.version = 11 : i64} {
  func.func @_mha_kernel(%arg0: i32, %arg1: i32, %arg2: memref<1x8x32xbf16, #tpu.memory_space<vmem>>, %arg3: memref<1x32x24xbf16, #tpu.memory_space<vmem>>, %arg4: memref<1x8x32xbf16, #tpu.memory_space<vmem>>, %arg5: memref<1x32xf32, #tpu.memory_space<vmem>>, %arg6: memref<1x8x32xbf16, #tpu.memory_space<vmem>>, %arg7: memref<8x32xf32, #tpu.memory_space<vmem>>) attributes {dimension_semantics = [#tpu.dimension_semantics<parallel>, #tpu.dimension_semantics<arbitrary>], iteration_bounds = array<i64: 2, 4>, scalar_prefetch = 0 : i64, scratch_operands = 1 : i64, tpu.core_type = #tpu.core_type<tc>, window_params = [{transform_indices = @transform_0, window_bounds = array<i64: 1, 8, 32>}, {transform_indices = @transform_1, window_bounds = array<i64: 1, 32, 24>}, {transform_indices = @transform_2, window_bounds = array<i64: 1, 8, 32>}, {pipeline_mode = #tpu.pipeline_mode<synchronous>, transform_indices = @transform_3, window_bounds = array<i64: 1, 32>}, {transform_indices = @transform_4, window_bounds = array<i64: 1, 8, 32>}]} {
    %c0_i32 = arith.constant 0 : i32
    %0 = arith.cmpi eq, %arg1, %c0_i32 : i32
    %1 = arith.extui %0 : i1 to i32
    %c0_i32_0 = arith.constant 0 : i32
    %2 = arith.cmpi ne, %1, %c0_i32_0 : i32
    scf.if %2 {
      %cst_20 = arith.constant 0.000000e+00 : f32
      %45 = vector.broadcast %cst_20 : f32 to vector<8x32xf32>
      %c0_21 = arith.constant 0 : index
      %c0_22 = arith.constant 0 : index
      %46 = vector.load %arg7[%c0_21, %c0_22] : memref<8x32xf32, #tpu.memory_space<vmem>>, vector<8x32xf32>
      tpu.vector_store %arg7[%c0_21, %c0_22], %45 {strides = array<i32>} : memref<8x32xf32, #tpu.memory_space<vmem>>, vector<8x32xf32>,
    } else {
    }
    %c0 = arith.constant 0 : index
    %c0_1 = arith.constant 0 : index
    %c0_2 = arith.constant 0 : index
    %3 = vector.load %arg2[%c0, %c0_1, %c0_2] : memref<1x8x32xbf16, #tpu.memory_space<vmem>>, vector<1x8x32xbf16>
    %4 = vector.shape_cast %3 : vector<1x8x32xbf16> to vector<8x32xbf16>
    %c0_3 = arith.constant 0 : index
    %c0_4 = arith.constant 0 : index
    %c0_5 = arith.constant 0 : index
    %5 = vector.load %arg3[%c0_3, %c0_4, %c0_5] : memref<1x32x24xbf16, #tpu.memory_space<vmem>>, vector<1x32x24xbf16>
    %6 = vector.shape_cast %5 : vector<1x32x24xbf16> to vector<32x24xbf16>
    %cst = arith.constant dense<0.000000e+00> : vector<8x24xf32>
    %7 = tpu.matmul %4, %6, %cst {dimension_numbers = #tpu.dot_dimension_numbers<[1], [0], [0], [1], [0, 0, 1, 1], [], []>} : vector<8x32xbf16>, vector<32x24xbf16>, vector<8x24xf32> -> vector<8x24xf32>
    %8 = arith.truncf %7 : vector<8x24xf32> to vector<8x24xbf16>
    %9 = vector.extract_strided_slice %8 {offsets = [0, 0], sizes = [8, 8], strides = [1, 1]} : vector<8x24xbf16> to vector<8x8xbf16>
    %10 = vector.shape_cast %9 : vector<8x8xbf16> to vector<1x8x8xbf16>
    %11 = vector.extract_strided_slice %8 {offsets = [0, 8], sizes = [8, 8], strides = [1, 1]} : vector<8x24xbf16> to vector<8x8xbf16>
    %12 = vector.shape_cast %11 : vector<8x8xbf16> to vector<1x8x8xbf16>
    %13 = vector.extract_strided_slice %8 {offsets = [0, 16], sizes = [8, 8], strides = [1, 1]} : vector<8x24xbf16> to vector<8x8xbf16>
    %14 = vector.shape_cast %13 : vector<8x8xbf16> to vector<1x8x8xbf16>
    "tpu.trace_start"() <{level = 10 : i32, message = "btd,bsd->bts"}> : () -> ()
    %cst_6 = arith.constant dense<0.000000e+00> : vector<1x8x8xf32>
    %15 = tpu.matmul %10, %12, %cst_6 {dimension_numbers = #tpu.dot_dimension_numbers<[2], [2], [1], [1], [0, 0, 0, 1, 1, 1], [0], [0]>} : vector<1x8x8xbf16>, vector<1x8x8xbf16>, vector<1x8x8xf32> -> vector<1x8x8xf32>
    "tpu.trace_stop"() : () -> ()
    %16 = tpu.iota {dimensions = array<i32: 0>} : vector<8x8xi32>
    %17 = tpu.iota {dimensions = array<i32: 1>} : vector<8x8xi32>
    %18 = arith.cmpi sle, %17, %16 : vector<8x8xi32>
    %cst_7 = arith.constant -1.000000e+30 : f32
    %19 = vector.shape_cast %18 : vector<8x8xi1> to vector<1x8x8xi1>
    %20 = vector.broadcast %cst_7 : f32 to vector<1x8x8xf32>
    %21 = arith.select %19, %15, %20 : vector<1x8x8xi1>, vector<1x8x8xf32>
    %cst_8 = arith.constant dense<0xFF800000> : vector<1x8xf32>
    %22 = vector.multi_reduction <maximumf>, %21, %cst_8 [2] : vector<1x8x8xf32> to vector<1x8xf32>
    %23 = vector.shape_cast %22 : vector<1x8xf32> to vector<1x8x1xf32>
    %24 = vector.broadcast %23 : vector<1x8x1xf32> to vector<1x8x8xf32>
    %25 = arith.subf %21, %24 : vector<1x8x8xf32>
    %26 = math.exp %25 : vector<1x8x8xf32>
    %cst_9 = arith.constant dense<0.000000e+00> : vector<1x8xf32>
    %27 = vector.multi_reduction <add>, %26, %cst_9 [2] : vector<1x8x8xf32> to vector<1x8xf32>
    %28 = vector.shape_cast %27 : vector<1x8xf32> to vector<1x8x1xf32>
    %29 = tpu.reciprocal %28 {approx = true} : vector<1x8x1xf32> -> vector<1x8x1xf32>
    %30 = vector.broadcast %29 : vector<1x8x1xf32> to vector<1x8x8xf32>
    %31 = arith.mulf %26, %30 : vector<1x8x8xf32>
    %32 = arith.truncf %31 : vector<1x8x8xf32> to vector<1x8x8xbf16>
    "tpu.trace_start"() <{level = 10 : i32, message = "bts,bsd->btd"}> : () -> ()
    %cst_10 = arith.constant dense<0.000000e+00> : vector<1x8x8xf32>
    %33 = tpu.matmul %32, %14, %cst_10 {dimension_numbers = #tpu.dot_dimension_numbers<[2], [1], [1], [2], [0, 0, 0, 1, 1, 2], [0], [0]>} : vector<1x8x8xbf16>, vector<1x8x8xbf16>, vector<1x8x8xf32> -> vector<1x8x8xf32>
    "tpu.trace_stop"() : () -> ()
    %c0_11 = arith.constant 0 : index
    %c0_12 = arith.constant 0 : index
    %34 = vector.load %arg7[%c0_11, %c0_12] : memref<8x32xf32, #tpu.memory_space<vmem>>, vector<8x32xf32>
    %35 = vector.shape_cast %33 : vector<1x8x8xf32> to vector<8x8xf32>
    %36 = arith.truncf %35 : vector<8x8xf32> to vector<8x8xbf16>
    %c0_13 = arith.constant 0 : index
    %c0_14 = arith.constant 0 : index
    %c0_15 = arith.constant 0 : index
    %37 = vector.load %arg4[%c0_13, %c0_14, %c0_15] : memref<1x8x32xbf16, #tpu.memory_space<vmem>>, vector<1x8x32xbf16>
    %38 = vector.shape_cast %37 : vector<1x8x32xbf16> to vector<8x32xbf16>
    %cst_16 = arith.constant dense<0.000000e+00> : vector<8x32xf32>
    %39 = tpu.matmul %36, %38, %cst_16 {dimension_numbers = #tpu.dot_dimension_numbers<[1], [0], [0], [1], [0, 0, 1, 1], [], []>} : vector<8x8xbf16>, vector<8x32xbf16>, vector<8x32xf32> -> vector<8x32xf32>
    %40 = arith.addf %34, %39 : vector<8x32xf32>
    %c0_17 = arith.constant 0 : index
    %c0_18 = arith.constant 0 : index
    %41 = vector.load %arg7[%c0_17, %c0_18] : memref<8x32xf32, #tpu.memory_space<vmem>>, vector<8x32xf32>
    tpu.vector_store %arg7[%c0_17, %c0_18], %40 {strides = array<i32>} : memref<8x32xf32, #tpu.memory_space<vmem>>, vector<8x32xf32>,
    %c3_i32 = arith.constant 3 : i32
    %42 = arith.cmpi eq, %arg1, %c3_i32 : i32
    %43 = arith.extui %42 : i1 to i32
    %c0_i32_19 = arith.constant 0 : i32
    %44 = arith.cmpi ne, %43, %c0_i32_19 : i32
    scf.if %44 {
      %c0_20 = arith.constant 0 : index
      %c0_21 = arith.constant 0 : index
      %45 = vector.load %arg7[%c0_20, %c0_21] : memref<8x32xf32, #tpu.memory_space<vmem>>, vector<8x32xf32>
      %c0_22 = arith.constant 0 : index
      %c0_23 = arith.constant 0 : index
      %46 = vector.load %arg5[%c0_22, %c0_23] : memref<1x32xf32, #tpu.memory_space<vmem>>, vector<1x32xf32>
      %47 = vector.broadcast %46 : vector<1x32xf32> to vector<8x32xf32>
      %48 = arith.addf %45, %47 : vector<8x32xf32>
      %49 = vector.shape_cast %48 : vector<8x32xf32> to vector<1x8x32xf32>
      %50 = arith.truncf %49 : vector<1x8x32xf32> to vector<1x8x32xbf16>
      %c0_24 = arith.constant 0 : index
      %c0_25 = arith.constant 0 : index
      %c0_26 = arith.constant 0 : index
      %51 = vector.load %arg6[%c0_24, %c0_25, %c0_26] : memref<1x8x32xbf16, #tpu.memory_space<vmem>>, vector<1x8x32xbf16>
      tpu.vector_store %arg6[%c0_24, %c0_25, %c0_26], %50 {strides = array<i32>} : memref<1x8x32xbf16, #tpu.memory_space<vmem>>, vector<1x8x32xbf16>,
    } else {
    }
    return
  }
  func.func @transform_0(%arg0: i32, %arg1: i32) -> (i32, i32, i32) {
    %c0_i32 = arith.constant 0 : i32
    %c0_i32_0 = arith.constant 0 : i32
    %c0_i32_1 = arith.constant 0 : i32
    return %arg0, %c0_i32, %c0_i32_0 : i32, i32, i32
  }
  func.func @transform_1(%arg0: i32, %arg1: i32) -> (i32, i32, i32) {
    %c0_i32 = arith.constant 0 : i32
    %c0_i32_0 = arith.constant 0 : i32
    %c0_i32_1 = arith.constant 0 : i32
    return %arg1, %c0_i32, %c0_i32_0 : i32, i32, i32
  }
  func.func @transform_2(%arg0: i32, %arg1: i32) -> (i32, i32, i32) {
    %c0_i32 = arith.constant 0 : i32
    %c0_i32_0 = arith.constant 0 : i32
    %c0_i32_1 = arith.constant 0 : i32
    return %arg1, %c0_i32, %c0_i32_0 : i32, i32, i32
  }
  func.func @transform_3(%arg0: i32, %arg1: i32) -> (i32, i32) {
    %c0_i32 = arith.constant 0 : i32
    %c0_i32_0 = arith.constant 0 : i32
    %c0_i32_1 = arith.constant 0 : i32
    return %c0_i32, %c0_i32_0 : i32, i32
  }
  func.func @transform_4(%arg0: i32, %arg1: i32) -> (i32, i32, i32) {
    %c0_i32 = arith.constant 0 : i32
    %c0_i32_0 = arith.constant 0 : i32
    %c0_i32_1 = arith.constant 0 : i32
    return %arg0, %c0_i32, %c0_i32_0 : i32, i32, i32
  }
}

</mosaic_0001>

<bundles_post_ra>
// kernel: tpu_custom_call.1
= control target key start
LH: loop header
LB: loop body
LE: loop exit
PB: predicated region body
PF: predicated region fallthrough
CT: control target
= control target key end

     0   :  { %9 = vsyncpa [#allocation4], 0  ;;  %s1027_s0 = inlined_call_operand.vmem [shape: bf16[2,8,32], index: 0, kind: input, shape index: {}]   ;;  %s1028_s1 = inlined_call_operand.vmem [shape: bf16[4,32,24], index: 1, kind: input, shape index: {}]   ;;  %s1029_s2 = inlined_call_operand.vmem [shape: bf16[4,8,32], index: 2, kind: input, shape index: {}]   ;;  %s1030_s3 = inlined_call_operand.vmem [shape: f32[1,32], index: 3, kind: input, shape index: {}]   ;;  %s1031_s4 = inlined_call_operand.hbm [shape: bf16[2,8,32], index: 4, kind: output, shape index: {}]  }
   0x1   :  { %11 = vsyncpa [#allocation4 + $0x1], 0  ;;  %s869_s15 = smov 0   ;;  %s871_s16 = smov 0  }
   0x2   :  { %s873_s17 = smov 0   ;;  %s875_s18 = smov 0  }
   0x3   :  { %s877_s19 = smov 0   ;;  %s879_s20 = smov 0  }
   0x4   :  { %s881_s21 = smov 0   ;;  %s883_s22 = smov 0  }
   0x5 LB: > { %1035 = sst [smem:[#allocation6_spill]] %s832_s21  ;;  %s603_s23 = sadd.s32 4294967295, %s836_s22   ;;  %s836_s22 = sphi %s883_s22, %s17_s22   ;;  %s832_s21 = sphi %s881_s21, %s1043_s21   ;;  %s828_s20 = sphi %s879_s20, %s1048_s20   ;;  %s824_s19 = sphi %s877_s19, %s1041_s19   ;;  %s820_s18 = sphi %s875_s18, %s1047_s18   ;;  %s816_s17 = sphi %s873_s17, %s1046_s17   ;;  %s812_s16 = sphi %s871_s16, %s1045_s16   ;;  %s808_s15 = sphi %s869_s15, %s1044_s15  }
   0x6   : > { %s604_s24 = sadd.s32 4294967294, %s836_s22   ;;  %s26_s25 = sadd.s32 1, %s828_s20 }
   0x7   : > { %p27_p0 = scmp.ge.s32.totalorder %s26_s25, 4  ;;  %s29_s26 = sadd.s32 1, %s832_s21 }
   0x8   : > { %p145_p1 = scmp.ne.s32.totalorder %s816_s17, %s812_s16  ;;  %p146_p2 = scmp.eq.s32.totalorder %s603_s23, 7 }
   0x9   : > { %s1050_s25 = smov (%p27_p0, %s26_s25), 0  ;;  %s1052_s26 = smov (!%p27_p0, %s29_s26), %s832_s21 }
   0xa   : > { %1036 = sst [smem:[#allocation7_spill]] %s1050_s25  ;;  %p918_p3 = por %p146_p2, %p145_p1 }
   0xb   : > { %p151_p4 = scmp.ne.s32.totalorder %s812_s16, %s808_s15  ;;  %p31_p5 = scmp.ge.s32.totalorder %s1052_s26, 2 }
   0xc   : > { %p152_p6 = scmp.eq.s32.totalorder %s604_s24, 7  ;;  %p607_p7 = scmp.ge.s32.totalorder %s836_s22, 1 }
   0xd   : > { %p195_p8 = scmp.lt.s32.totalorder %s836_s22, 9  ;;  %s1054_s26 = smov (%p31_p5, %s1052_s26), 0 }
   0xe   : > { %1038 = sst [smem:[#allocation8_spill]] %s1054_s26  ;;  %p928_p9 = por %p152_p6, %p151_p4 }
   0xf   : > { %p196_p10 = pnand %p607_p7, %p195_p8  ;;  %s132_s29 = ssub.s32 %s832_s21, %s1054_s26 }
  0x10   : > { %s135_s30 = sadd.s32 1, %s816_s17  ;;  %p133_p11 = scmp.eq.s32.totalorder %s132_s29, 0 }
  0x11   : > { %199 = sbr.rel (%p196_p10) target bundleno = 1293 (0x50d), region = 36  ;;  %s1033_s6 = sand.u32 (!%p196_p10), 1, %s812_s16  }
  0x12   : > { %s936_s5 = scalar_select %p133_p11, %s816_s17, %s135_s30  }
  0x13   : > { %p229_p12 = scmp.lt.s32.totalorder (!%p196_p10), %s824_s19, 1  ;;  %s942_s7 = sshll.u32 (!%p196_p10), %s1033_s6, 2 }
  0x14   : > { %p233_p13 = scmp.lt.s32.totalorder (!%p196_p10), %s820_s18, 3  ;;  %s228_s21 = scalar_lea.vmem (!%p196_p10), [#allocation3], %s942_s7 }
  0x15   : > { %p613_p0 = scmp.ne.s32.totalorder (!%p196_p10), %s820_s18, 0 }
  0x16   : > { %s230_s8 = scalar_select %p229_p12, %s824_s19, 1 }
  0x17   : > { %s234_s9 = scalar_select %p233_p13, %s820_s18, 3 }
  0x18   : > { %s609_s10 = sshll.u32 %s230_s8, 2  ;;  %246 = sbr.rel (%p613_p0) target bundleno = 31 (0x1f), region = 40 }
  0x19   : > { %s232_s13 = scalar_lea.vmem %s1027_s0, %s609_s10  ;;  %s626_s14 = sshll.u32 %s234_s9, 4 }
  0x1a   : > { %s237_s29 = scalar_lea.vmem %s1028_s1, %s626_s14  ;;  %s612_s30 = sshll.u32 %s234_s9, 2 }
  0x1b   : > { %s956_s6 = scalar_lea.vmem %s1029_s2, %s612_s30 }
  0x1d   : > { %vm247_vm0 = vcmask 261120   ;;  %v838_v0 = vmov 0.0  }
  0x1e   : > { %248 = vst.msk [vmem:[#allocation2] sm:$0xff] %vm247_vm0, %v838_v0 }
  0x1f PF: > { %v738_v1 = vld [vmem:[%s237_s29 + $0x8] sm:$0xff]   ;;  %v839_v2 = vmov 0.0   ;;  %v739_v3 = vld [vmem:[%s237_s29] sm:$0xff]   ;;  %vm840_vm1 = vmmov 0   ;;  %vm266_vm2 = vcmask 261120   ;;  %s841_s25 = smov 120   ;;  %v361_v12 = vlaneseq }
  0x20   : > { %636 = vmatprep.subr.bf16.mxu0 %v839_v2  ;;  %644 = vmatprep.subr.bf16.mxu1 %v839_v2  ;;  %v249_v4 = vld [vmem:[%s232_s13] sm:$0xf]  ;;  %vm314_vm3 = vcmask 64512   ;;  %vm384_vm5 = vcmask 1043456   ;;  %s842_s26 = smov 112   ;;  %p620_p1 = scmp.ne.s32.totalorder %s820_s18, 3 }
  0x21   : > { %637 = vmatpush3.bf16.msra.mxu0 %v738_v1  ;;  %640 = vmatprep.mubr.msk.bf16.mxu0 %vm840_vm1, %v839_v2  ;;  %v362_v13 = vshrl.u32 %v361_v12, 7  ;;  %v364_v14 = vand.u32 127, %v361_v12  ;;  %v430_v26 = vld [vmem:[%s956_s6] sm:$0xf] }
  0x22   : > { %638 = vmatprep.subr.bf16.mxu0 %v839_v2  ;;  %646 = vmatprep.mubr.msk.bf16.mxu1 %vm840_vm1, %v839_v2  ;;  %v435_v27 = vsel %vm384_vm5, %v430_v26, 0 }
  0x23   : > { %vm365_vm4 = vcmp.le.s32.totalorder %v364_v14, %v362_v13 }
  0x25   : > { %639 = vmatpush3.bf16.msra.mxu0 %v739_v3  ;;  %v428_v39 = vld [vmem:[#allocation2] sm:$0xff] }
  0x26   : > { %650 = vmatprep.subr.bf16.mxu0 %v839_v2 }
  0x28   : > { %641 = vmatmul.mubr.msk.bf16.vlgmr.msra.gmra.mxu0 %vm266_vm2, %v249_v4 }
  0x29   : > { %652 = vmatprep.mubr.msk.bf16.mxu0 %vm840_vm1, %v839_v2 }
  0xe8   : > { %v304_v5 = vpop.f32.mrf.mxu0 }
  0xe9   : > { %v310_v6 = vpack.c.bf16 %v304_v5, %v304_v5 }
  0xea   : > { %v642_v7 = vpop.f32.mrf.mxu0 }
  0xeb   : > { %312 = vrot.lane.b32.xlu0 %v310_v6, %s841_s25 }
  0xec   : > { %v307_v8 = vpop.f32.mrf.mxu0 }
  0xee   : > { %v643_v9 = vpop.f32.mrf.mxu0 }
 0x15d   : > { %v313_v10 = vpop.permute.xlu0 %312 }
 0x15e   : > { %v319_v11 = vsel %vm314_vm3, %v313_v10, 0 }
 0x15f   : > { %645 = vmatpush3.bf16.xpose.msra.mxu1 %v319_v11 }
 0x160   : > { %656 = vmatprep.subr.bf16.mxu1 %v839_v2 }
 0x166   : > { %647 = vmatmul.mubr.msk.bf16.vlgmr.msra.gmra.mxu1 %vm314_vm3, %v310_v6 }
 0x167   : > { %658 = vmatprep.mubr.msk.bf16.mxu1 %vm840_vm1, %v839_v2  ;;  %657 = vmatpush3.bf16.msra.mxu1 %v435_v27 }
 0x226   : > { %v355_v15 = vpop.f32.mrf.mxu1 }
 0x227   : > { %v366_v16 = vsel %vm365_vm4, %v355_v15, -1e+30 }
 0x228   : > { %v648_v17 = vpop.f32.mrf.mxu1  ;;  %v367_v18 = vsel %vm314_vm3, %v366_v16, -inf }
 0x229   : > { %368 = vmax.xlane.f32.xlu0 %v367_v18 }
 0x22a   : > { %v358_v19 = vpop.f32.mrf.mxu1 }
 0x22c   : > { %v649_v20 = vpop.f32.mrf.mxu1 }
 0x2b2   : > { %v369_v21 = vpop.xlane.xlu0 %368 }
 0x2b3   : > { %v370_v22 = vsub.f32 %v366_v16, %v369_v21 }
 0x2b5   : > { %v371_v23 = vmul.f32 1.442695, %v370_v22 }
 0x2b7   : > { %740 = vpow2.f32 %v371_v23 }
 0x2c4   : > { %v741_v24 = vpop.eup %740 }
 0x2c5   : > { %v373_v25 = vsel %vm314_vm3, %v741_v24, 0.0 }
 0x2c6   : > { %374 = vadd.xlane.f32.xlu1 %v373_v25 }
 0x2d7   : > { %379 = vrot.lane.b32.xlu1 %v310_v6, %s842_s26 }
 0x34f   : > { %v375_v28 = vpop.xlane.xlu1 %374 }
 0x350   : > { %742 = vrcp.f32 %v375_v28 }
 0x353   : > { %v380_v29 = vpop.permute.xlu1 %379 }
 0x354   : > { %v386_v30 = vsel %vm384_vm5, %v380_v29, 0 }
 0x355   : > { %651 = vmatpush3.bf16.msra.mxu0 %v386_v30 }
 0x35d   : > { %v743_v31 = vpop.eup %742 }
 0x35e   : > { %v377_v32 = vmul.f32 %v743_v31, %v741_v24 }
 0x360   : > { %v378_v33 = vpack.c.bf16 %v377_v32, %v377_v32 }
 0x362   : > { %653 = vmatmul.mubr.msk.bf16.vlgmr.msra.gmra.mxu0 %vm314_vm3, %v378_v33 }
 0x422   : > { %v422_v34 = vpop.f32.mrf.mxu0 }
 0x423   : > { %v429_v35 = vpack.c.bf16 %v422_v34, %v422_v34 }
 0x424   : > { %v654_v36 = vpop.f32.mrf.mxu0 }
 0x425   : > { %659 = vmatmul.mubr.msk.bf16.vlgmr.msra.gmra.mxu1 %vm314_vm3, %v429_v35 }
 0x426   : > { %v425_v37 = vpop.f32.mrf.mxu0 }
 0x428   : > { %v655_v38 = vpop.f32.mrf.mxu0 }
 0x4e5   : > { %v471_v40 = vpop.f32.mrf.mxu1 }
 0x4e6   : > { %v477_v41 = vadd.f32 %v471_v40, %v428_v39 }
 0x4e7   : > { %v660_v42 = vpop.f32.mrf.mxu1  ;;  %482 = sbr.rel (%p620_p1) target bundleno = 1269 (0x4f5), region = 44 }
 0x4e8   : > { %478 = vst.msk [vmem:[#allocation2] sm:$0xff] %vm266_vm2, %v477_v41 }
 0x4e9   : > { %v474_v43 = vpop.f32.mrf.mxu1 }
 0x4eb   : > { %v661_v44 = vpop.f32.mrf.mxu1 }
 0x4ec   : > { %v621_v46 = vld [vmem:[%s1030_s3] ss:$0 sm:$0xff]  ;;  %vm493_vm6 = vcmask 257024  }
 0x4ef   : > { %v483_v45 = vld [vmem:[#allocation2] sm:$0xff] }
 0x4f0   : > { %v491_v47 = vadd.f32 %v621_v46, %v483_v45 }
 0x4f2   : > { %v492_v48 = vpack.c.bf16 %v491_v47, %v491_v47 }
 0x4f4   : > { %494 = vst.msk [vmem:[%s228_s21] sm:$0xf] %vm493_vm6, %v492_v48 }
 0x4f5 PF: > { %s623_s9 = sshll.u32 %s824_s19, 6  ;;  %s509_s12 = sshll.u32 %s228_s21, 4  ;;  %s510_s12 = int_to_ptr.vmem [resolvable:$true] %s509_s12 }
 0x4f6   : > { %s507_s11 = scalar_lea.hbm %s1031_s4, %s623_s9  ;;  %s1040_s13 = sand.u32 1, %s812_s16  }
 0x4f7   : > { %s496_s14 = scalar_lea.sflag [#allocation4], %s1040_s13  ;;  %s744_s23 = scalar_lea.vmem %s510_s12, 64 }
 0x4f8   : > { %p745_p2 = scmp.ne.s32.totalorder %s510_s12, %s744_s23  ;;  %s843_s24 = smov [#allocation3]  }
 0x4f9   : > { %s748_s29 = sshll.u32 %s843_s24, 4  ;;  %s749_s29 = int_to_ptr.vmem [resolvable:$false] %s748_s29 }
 0x4fa   : > { %p746_p4 = pnand %p745_p2, %p918_p3  ;;  %s750_s30 = scalar_lea.vmem %s749_s29, 128 }
 0x4fb   : > { %p751_p6 = scmp.lt.s32.totalorder %s510_s12, %s749_s29  ;;  %p752_p7 = scmp.lt.s32.totalorder %s750_s30, %s744_s23 }
 0x4fc   : > { %p747_p5 = pneg %p746_p4 }
 0x4fd   : > { %p753_p8 = por %p752_p7, %p751_p6 }
 0x4ff   : > { %p754_p10 = pnand %p753_p8, %p747_p5 }
 0x501   : > { %757 = shalt.err (!%p754_p10)
}
 0x502   : > { %s758_s19 = scalar_lea.hbm %s507_s11, 64  ;;  %s762_s25 = scalar_lea.hbm %s1031_s4, 128 }
 0x503   : > { %p759_p11 = scmp.ne.s32.totalorder %s507_s11, %s758_s19  ;;  %p763_p0 = scmp.lt.s32.totalorder %s507_s11, %s1031_s4 }
 0x504   : > { %p764_p1 = scmp.lt.s32.totalorder %s762_s25, %s758_s19 }
 0x505   : > { %p760_p12 = pnand %p759_p11, %p918_p3 }
 0x506   : > { %p765_p2 = por %p764_p1, %p763_p0 }
 0x507   : > { %p761_p13 = pneg %p760_p12 }
 0x509   : > { %p766_p4 = pnand %p765_p2, %p761_p13 }
 0x50b   : > { %769 = shalt.err (!%p766_p4)
}
 0x50c   : > { %662 = dma.vmem_to_hbm [thread:$0]  (%p918_p3), %s510_s12, 64, %s507_s11, %s496_s14  }
 0x50d PF: > { %p668_p5 = scmp.ge.s32.totalorder %s836_s22, 2  ;;  %s521_s8 = sand.u32 1, %s808_s15  }
 0x50e   : > { %s522_s9 = scalar_lea.sflag [#allocation4], %s521_s8 }
 0x50f   : > { %p665_p6 = pnand %p668_p5, %p928_p9 }
 0x511   : > { %p666_p7 = pneg %p665_p6 }
 0x513   : > { %803 = dma.done.wait (%p666_p7), %s522_s9, 64  }
 0x514   : > { %805 = vsyncadd (%p666_p7), %s522_s9, 4294967232  ;;  %s17_s22 = sadd.s32 1, %s836_s22   ;;  %s1041_s19 = sld [smem:[#allocation6_spill]] }
 0x515   : > { %p14_p8 = scmp.ge.s32.totalorder %s17_s22, 10   ;;  %s1042_s27 = sld [smem:[#allocation7_spill]] }
 0x516   : > { %s1043_s21 = sld [smem:[#allocation8_spill]]  ;;  %s1044_s15 = smov %s812_s16 }
 0x517   : > { %s1045_s16 = smov %s816_s17  ;;  %s1046_s17 = smov %s936_s5 }
 0x518   : > { %s1047_s18 = smov %s828_s20  ;;  %16 = sbr.rel (!%p14_p8) target bundleno = 5 (0x5), region = 85 }
 0x51b   : > { %s1048_s20 = smov %s1042_s27 }
 0x51d   :  { %527 = vsyncpa [#allocation4], 1 }
 0x51e   :  { %529 = vsyncpa [#allocation4 + $0x1], 1 }

</bundles_post_ra>
